<compile_context>
chip_gen: v7x
topology: tpu7x:2x2x1
jax: 0.10.0
libtpu: 0.0.40
codegen_flags: <defaults>
</compile_context>

<pallas_src>
import numpy as np
import jax
import jax.numpy as jnp
from jax.experimental import pallas as pl
from jax.experimental.pallas import tpu as pltpu


# --------------------------------------------------------------------------
# host-side filter / selection-matrix construction
# --------------------------------------------------------------------------
def _hanning_taps(filter_size=5):
    a = np.hanning(filter_size)[1:-1].astype(np.float64)   # e.g. [0.5, 1.0, 0.5]
    # outer(a,a)/sum(outer(a,a)) == outer(a/sum(a), a/sum(a))  (separable)
    return a / a.sum()                                      # [0.25, 0.5, 0.25]


def _sel_matrix(n_in, n_out, taps, stride, pad):
    """(n_out, n_in) selection matrix: row o holds the 1-D taps at input
    positions stride*o - pad + k.  Out-of-range positions (the conv's zero
    padding) simply have no column, so the image is never padded."""
    m = np.zeros((n_out, n_in), np.float32)
    for o in range(n_out):
        for k, t in enumerate(taps):
            j = stride * o - pad + k
            if 0 <= j < n_in:
                m[o, j] = np.float32(t)
    return m


def _round_up(x, m):
    return ((x + m - 1) // m) * m


# --------------------------------------------------------------------------
# generation-aware tuning (VMEM budget, vmem_limit, minimum grid depth)
# --------------------------------------------------------------------------
def _vmem_capacity_bytes():
    try:
        cap = int(getattr(pltpu.get_tpu_info(), "vmem_capacity_bytes", 0))
        if cap > 0:
            return cap
    except Exception:
        pass
    return 64 * 1024 * 1024        # conservative default (v7x-class part)


def _generation_tuning():
    cap = _vmem_capacity_bytes()
    if cap >= 100 * 1024 * 1024:
        # 128 MiB VMEM parts (v5e / v6e): 1 TensorCore -> >=2 steps for overlap.
        return dict(block_budget=48 << 20, vmem_limit=96 << 20, min_steps=2)
    # 64 MiB VMEM parts (v7x): half the VMEM, 2 TensorCores -> >=2 steps each.
    return dict(block_budget=16 << 20, vmem_limit=32 << 20, min_steps=4)


def _pick_block_channels(nc, H, W, Ho, Wo, itemsize, block_budget, min_steps):
    """Channels per grid step.  The VMEM budget covers the double-buffered
    in/out blocks plus per-step f32 temporaries (x*x, column-pass result,
    broadcast a_row, row-pass result), all padded to the (8, 128) tiling."""
    in_blk = 2 * _round_up(H, 8) * _round_up(W, 128) * itemsize
    out_blk = 2 * _round_up(Ho, 8) * _round_up(Wo, 128) * itemsize
    temps = (_round_up(H, 8) * _round_up(W, 128)       # x * x
             + _round_up(H, 8) * _round_up(Wo, 128)    # column-pass intermediate
             + _round_up(Ho, 8) * _round_up(H, 128)    # broadcast a_row
             + _round_up(Ho, 8) * _round_up(Wo, 128)   # row-pass result
             ) * 4
    per_ch = in_blk + out_blk + temps
    bc_budget = max(1, block_budget // per_ch)
    bc_max = max(1, min(bc_budget, nc // min_steps))   # keep the grid deep enough
    # Prefer an exact divisor of nc (no channel padding) when it is within 2x of
    # the budgeted block size; otherwise take bc_max and pad nc up to a multiple.
    best_div = 1
    for d in range(1, bc_max + 1):
        if nc % d == 0:
            best_div = d
    if 2 * best_div >= bc_max:
        return best_div
    return bc_max


# --------------------------------------------------------------------------
# kernel
# --------------------------------------------------------------------------
def _make_l2pool_kernel(bc, H, W, Ho, Wo, eps=1e-12):
    def kernel(a_row_ref, a_col_ref, x_ref, o_ref):
        # Squared input; flatten channels onto the M/sublane dim (free when
        # H % 8 == 0, since W stays the lane dim).
        x = x_ref[...].astype(jnp.float32)                      # (bc, H, W)
        x2 = (x * x).reshape(bc * H, W)
        # Column pass: one merged MXU matmul, a_col weight-stationary.
        t = jnp.dot(x2, a_col_ref[...],
                    preferred_element_type=jnp.float32)         # (bc*H, Wo)
        # Row pass: single batched (B,M,K)x(B,K,N) dot_general over channels
        # (no per-channel Python unroll -> bounded live ranges, small code).
        t3 = t.reshape(bc, H, Wo)
        a_row_b = jnp.broadcast_to(a_row_ref[...][None, :, :], (bc, Ho, H))
        y = jnp.einsum('coh,chw->cow', a_row_b, t3,
                       preferred_element_type=jnp.float32)      # (bc, Ho, Wo)
        o_ref[...] = jnp.sqrt(y + eps).astype(o_ref.dtype)
    return kernel


# --------------------------------------------------------------------------
# public wrapper (PyTorch NCHW convention)
# --------------------------------------------------------------------------
def l2pooling(x, *, filter_size=5, stride=2):
    """Pallas TPU implementation of L2pooling.forward. x is NCHW."""
    N, C, H, W = x.shape
    pad = (filter_size - 2) // 2        # pad_off is unused in the reference module
    K = filter_size - 2                 # effective kernel size (3 for filter_size=5)
    Ho = (H + 2 * pad - K) // stride + 1
    Wo = (W + 2 * pad - K) // stride + 1

    taps = _hanning_taps(filter_size)
    a_row = jnp.asarray(_sel_matrix(H, Ho, taps, stride, pad))      # (Ho, H)
    a_col = jnp.asarray(_sel_matrix(W, Wo, taps, stride, pad).T)    # (W, Wo)

    tune = _generation_tuning()
    nc = N * C
    bc = _pick_block_channels(nc, H, W, Ho, Wo, x.dtype.itemsize,
                              tune["block_budget"], tune["min_steps"])
    n_blocks = -(-nc // bc)
    nc_pad = n_blocks * bc

    xf = x.reshape(nc, H, W)
    if nc_pad != nc:
        # Only when nc has no decent divisor: pad with zero channels (at most
        # one extra block of work) instead of collapsing to bc=1.
        xf = jnp.pad(xf, ((0, nc_pad - nc), (0, 0), (0, 0)))

    out = pl.pallas_call(
        _make_l2pool_kernel(bc, H, W, Ho, Wo),
        out_shape=jax.ShapeDtypeStruct((nc_pad, Ho, Wo), x.dtype),
        grid=(n_blocks,),
        in_specs=[
            # Selection matrices: constant index_map -> DMA'd once, VMEM-resident.
            pl.BlockSpec((Ho, H), lambda b: (0, 0)),
            pl.BlockSpec((W, Wo), lambda b: (0, 0)),
            pl.BlockSpec((bc, H, W), lambda b: (b, 0, 0)),
        ],
        out_specs=pl.BlockSpec((bc, Ho, Wo), lambda b: (b, 0, 0)),
        compiler_params=pltpu.CompilerParams(
            dimension_semantics=("parallel",),        # shard channel blocks across cores
            vmem_limit_bytes=tune["vmem_limit"],
        ),
    )(a_row, a_col, xf)

    if nc_pad != nc:
        out = out[:nc]
    return out.reshape(N, C, Ho, Wo)


# --------------------------------------------------------------------------
# pure-JAX reference mirroring the PyTorch forward exactly
# --------------------------------------------------------------------------
def l2pooling_ref(x, filter_size=5, stride=2):
    a = np.hanning(filter_size)[1:-1]
    g = np.outer(a, a)
    g = (g / g.sum()).astype(np.float32)
    pad = (filter_size - 2) // 2
    K = filter_size - 2
    xp = jnp.pad(x.astype(jnp.float32) ** 2, ((0, 0), (0, 0), (pad, pad), (pad, pad)))
    Ho = (x.shape[2] + 2 * pad - K) // stride + 1
    Wo = (x.shape[3] + 2 * pad - K) // stride + 1
    out = jnp.zeros((x.shape[0], x.shape[1], Ho, Wo), jnp.float32)
    for dy in range(K):
        for dx in range(K):
            out = out + g[dy, dx] * xp[:, :,
                                       dy:dy + stride * Ho:stride,
                                       dx:dx + stride * Wo:stride]
    return jnp.sqrt(out + 1e-12)


if __name__ == "__main__":
    key = jax.random.PRNGKey(0)
    x = jax.random.normal(key, (2, 4, 16, 16), dtype=jnp.float32)  # NCHW

    out = jax.block_until_ready(l2pooling(x))
    ref = jax.block_until_ready(l2pooling_ref(x))

    assert out.shape == (2, 4, 8, 8), out.shape
    err = float(jnp.max(jnp.abs(out - ref)))
    if err < 1e-5:
        print("KERNEL_OK")
    else:
        print(f"MISMATCH max_abs_err={err}")
</pallas_src>

<mosaic_0001>
module attributes {stable_mosaic.version = 11 : i64} {
  func.func @kernel(%arg0: i32, %arg1: memref<8x16xf32, #tpu.memory_space<vmem>>, %arg2: memref<16x8xf32, #tpu.memory_space<vmem>>, %arg3: memref<2x16x16xf32, #tpu.memory_space<vmem>>, %arg4: memref<2x8x8xf32, #tpu.memory_space<vmem>>) attributes {dimension_semantics = [#tpu.dimension_semantics<parallel>], iteration_bounds = array<i64: 4>, scalar_prefetch = 0 : i64, scratch_operands = 0 : i64, tpu.core_type = #tpu.core_type<tc>, window_params = [{pipeline_mode = #tpu.pipeline_mode<synchronous>, transform_indices = @transform_0, window_bounds = array<i64: 8, 16>}, {pipeline_mode = #tpu.pipeline_mode<synchronous>, transform_indices = @transform_1, window_bounds = array<i64: 16, 8>}, {transform_indices = @transform_2, window_bounds = array<i64: 2, 16, 16>}, {transform_indices = @transform_3, window_bounds = array<i64: 2, 8, 8>}]} {
    %c0 = arith.constant 0 : index
    %c0_0 = arith.constant 0 : index
    %c0_1 = arith.constant 0 : index
    %0 = vector.load %arg3[%c0, %c0_0, %c0_1] : memref<2x16x16xf32, #tpu.memory_space<vmem>>, vector<2x16x16xf32>
    %1 = arith.mulf %0, %0 : vector<2x16x16xf32>
    %2 = vector.shape_cast %1 : vector<2x16x16xf32> to vector<32x16xf32>
    %c0_2 = arith.constant 0 : index
    %c0_3 = arith.constant 0 : index
    %3 = vector.load %arg2[%c0_2, %c0_3] : memref<16x8xf32, #tpu.memory_space<vmem>>, vector<16x8xf32>
    %cst = arith.constant dense<0.000000e+00> : vector<32x8xf32>
    %4 = tpu.matmul %2, %3, %cst {dimension_numbers = #tpu.dot_dimension_numbers<[1], [0], [0], [1], [0, 0, 1, 1], [], []>} : vector<32x16xf32>, vector<16x8xf32>, vector<32x8xf32> -> vector<32x8xf32>
    %5 = vector.shape_cast %4 : vector<32x8xf32> to vector<2x16x8xf32>
    %c0_4 = arith.constant 0 : index
    %c0_5 = arith.constant 0 : index
    %6 = vector.load %arg1[%c0_4, %c0_5] : memref<8x16xf32, #tpu.memory_space<vmem>>, vector<8x16xf32>
    %7 = vector.shape_cast %6 : vector<8x16xf32> to vector<1x8x16xf32>
    %8 = vector.shape_cast %7 : vector<1x8x16xf32> to vector<1x8x16xf32>
    %9 = vector.broadcast %8 : vector<1x8x16xf32> to vector<2x8x16xf32>
    "tpu.trace_start"() <{level = 10 : i32, message = "coh,chw->cow"}> : () -> ()
    %cst_6 = arith.constant dense<0.000000e+00> : vector<2x8x8xf32>
    %10 = tpu.matmul %9, %5, %cst_6 {dimension_numbers = #tpu.dot_dimension_numbers<[2], [1], [1], [2], [0, 0, 0, 1, 1, 2], [0], [0]>} : vector<2x8x16xf32>, vector<2x16x8xf32>, vector<2x8x8xf32> -> vector<2x8x8xf32>
    "tpu.trace_stop"() : () -> ()
    %cst_7 = arith.constant 9.99999996E-13 : f32
    %11 = vector.broadcast %cst_7 : f32 to vector<2x8x8xf32>
    %12 = arith.addf %10, %11 : vector<2x8x8xf32>
    %13 = math.sqrt %12 : vector<2x8x8xf32>
    %c0_8 = arith.constant 0 : index
    %c0_9 = arith.constant 0 : index
    %c0_10 = arith.constant 0 : index
    %14 = vector.load %arg4[%c0_8, %c0_9, %c0_10] : memref<2x8x8xf32, #tpu.memory_space<vmem>>, vector<2x8x8xf32>
    tpu.vector_store %arg4[%c0_8, %c0_9, %c0_10], %13 {strides = array<i32>} : memref<2x8x8xf32, #tpu.memory_space<vmem>>, vector<2x8x8xf32>,
    return
  }
  func.func @transform_0(%arg0: i32) -> (i32, i32) {
    %c0_i32 = arith.constant 0 : i32
    %c0_i32_0 = arith.constant 0 : i32
    %c0_i32_1 = arith.constant 0 : i32
    return %c0_i32, %c0_i32_0 : i32, i32
  }
  func.func @transform_1(%arg0: i32) -> (i32, i32) {
    %c0_i32 = arith.constant 0 : i32
    %c0_i32_0 = arith.constant 0 : i32
    %c0_i32_1 = arith.constant 0 : i32
    return %c0_i32, %c0_i32_0 : i32, i32
  }
  func.func @transform_2(%arg0: i32) -> (i32, i32, i32) {
    %c0_i32 = arith.constant 0 : i32
    %c0_i32_0 = arith.constant 0 : i32
    %c0_i32_1 = arith.constant 0 : i32
    return %arg0, %c0_i32, %c0_i32_0 : i32, i32, i32
  }
  func.func @transform_3(%arg0: i32) -> (i32, i32, i32) {
    %c0_i32 = arith.constant 0 : i32
    %c0_i32_0 = arith.constant 0 : i32
    %c0_i32_1 = arith.constant 0 : i32
    return %arg0, %c0_i32, %c0_i32_0 : i32, i32, i32
  }
}

</mosaic_0001>

<bundles_post_ra>
// kernel: tpu_custom_call.1
= control target key start
LH: loop header
LB: loop body
LE: loop exit
PB: predicated region body
PF: predicated region fallthrough
CT: control target
= control target key end

     0   :  { %8 = vsyncpa [#allocation3], 0  ;;  %s980_s0 = inlined_call_operand.vmem [shape: f32[8,16], index: 0, kind: input, shape index: {}]   ;;  %s981_s1 = inlined_call_operand.vmem [shape: f32[16,8], index: 1, kind: input, shape index: {}]   ;;  %s982_s2 = inlined_call_operand.hbm [shape: f32[8,16,16], index: 2, kind: input, shape index: {}]   ;;  %s983_s3 = inlined_call_operand.hbm [shape: f32[8,8,8], index: 3, kind: output, shape index: {}]  }
   0x1   :  { %10 = vsyncpa [#allocation3 + $0x1], 0 }
   0x2   :  { %11 = vsyncpa [#allocation4], 0 }
   0x3   :  { %13 = vsyncpa [#allocation4 + $0x1], 0  ;;  %s802_s12 = smov 0   ;;  %s804_s13 = smov 0  }
   0x4   :  { %s806_s14 = smov 0   ;;  %s808_s15 = smov 0  }
   0x5 LB: > { %s823_s16 = sadd.s32 4294967295, %s771_s15   ;;  %s548_s17 = sadd.s32 4294967294, %s771_s15   ;;  %s771_s15 = sphi %s808_s15, %s995_s15   ;;  %s767_s14 = sphi %s806_s14, %s994_s14   ;;  %s763_s13 = sphi %s804_s13, %s993_s13   ;;  %s759_s12 = sphi %s802_s12, %s992_s12  }
   0x6   : > { %s827_s18 = sadd.s32 1, %s771_s15   ;;  %s68_s19 = sadd.s32 1, %s767_s14 }
   0x7   : > { %s65_s20 = ssub.s32 %s771_s15, %s827_s18  ;;  %p75_p0 = scmp.ne.s32.totalorder %s767_s14, %s763_s13 }
   0x8   : > { %p66_p1 = scmp.eq.s32.totalorder %s65_s20, 0  ;;  %p76_p2 = scmp.eq.s32.totalorder %s771_s15, 0 }
   0x9   : > { %p81_p3 = scmp.ne.s32.totalorder %s763_s13, %s759_s12  ;;  %p82_p4 = scmp.eq.s32.totalorder %s823_s16, 0 }
   0xa   : > { %s839_s21 = scalar_select %p66_p1, %s767_s14, %s68_s19  }
   0xb   : > { %p841_p5 = por %p76_p2, %p75_p0  ;;  %p845_p6 = por %p82_p4, %p81_p3 }
   0xc   : > { %p105_p7 = scmp.eq.s32.totalorder %s823_s16, 3  ;;  %p111_p8 = scmp.eq.s32.totalorder %s548_s17, 3 }
   0xd   : > { %p630_p9 = scmp.lt.s32.totalorder %s771_s15, 4  ;;  %s137_s26 = sand.u32 1, %s767_s14  }
   0xe   : > { %p851_p10 = por %p105_p7, %p75_p0  ;;  %p855_p11 = por %p111_p8, %p81_p3 }
   0xf   : > { %s570_s27 = sshll.u32 %s771_s15, 9  ;;  %s551_s28 = sshll.u32 %s137_s26, 5 }
  0x10   : > { %s987_s24 = scalar_select %p851_p10, 1, 0 }
  0x11   : > { %s988_s25 = scalar_select %p855_p11, 1, 0 }
  0x12   : > { %s864_s4 = scalar_lea.hbm %s982_s2, %s570_s27  ;;  %s141_s5 = scalar_lea.vmem [#allocation2], %s551_s28 }
  0x13   : > { %s149_s6 = sshll.u32 %s141_s5, 4  ;;  %p868_p12 = pnand %p630_p9, %p841_p5  ;;  %s872_s6 = int_to_ptr.vmem [resolvable:$true] %s149_s6 }
  0x14   : > { %s874_s8 = scalar_lea.sflag [#allocation3], %s137_s26  ;;  %s675_s9 = scalar_lea.hbm %s864_s4, 512 }
  0x15   : > { %p676_p13 = scmp.ne.s32.totalorder %s864_s4, %s675_s9  ;;  %p677_p0 = pneg %p868_p12 }
  0x16   : > { %s680_s17 = scalar_lea.hbm %s982_s2, 2048  ;;  %p681_p3 = scmp.lt.u32.totalorder %s864_s4, %s982_s2 }
  0x17   : > { %p678_p1 = pnand %p677_p0, %p676_p13  ;;  %p682_p4 = scmp.lt.u32.totalorder %s680_s17, %s675_s9 }
  0x18   : > { %p684_p7 = scmp.lt.u32.totalorder %s675_s9, %s864_s4 }
  0x19   : > { %p679_p2 = pneg %p678_p1  ;;  %p683_p5 = por %p682_p4, %p681_p3 }
  0x1b   : > { %p685_p8 = por %p684_p7, %p683_p5 }
  0x1d   : > { %p686_p9 = pnand %p685_p8, %p679_p2 }
  0x1f   : > { %689 = shalt.err (!%p686_p9)
}
  0x20   : > { %s690_s22 = scalar_lea.vmem %s872_s6, 512  ;;  %s773_s26 = smov [#allocation2]  }
  0x21   : > { %p691_p13 = scmp.ne.s32.totalorder %s872_s6, %s690_s22  ;;  %s695_s27 = sshll.u32 %s773_s26, 4  ;;  %s696_s27 = int_to_ptr.vmem [resolvable:$false] %s695_s27 }
  0x22   : > { %s697_s28 = scalar_lea.vmem %s696_s27, 1024  ;;  %p698_p10 = scmp.lt.s32.totalorder %s872_s6, %s696_s27 }
  0x23   : > { %p693_p1 = pnand %p691_p13, %p677_p0  ;;  %p699_p3 = scmp.lt.s32.totalorder %s697_s28, %s690_s22 }
  0x25   : > { %p694_p11 = pneg %p693_p1  ;;  %p700_p4 = por %p699_p3, %p698_p10 }
  0x27   : > { %p701_p5 = pnand %p700_p4, %p694_p11 }
  0x29   : > { %704 = shalt.err (!%p701_p5)
}
  0x2a   : > { %s774_s29 = smov 128   ;;  %s775_s30 = smov 8  }
  0x2b   : > { %625 = dma.hbm_to_vmem [thread:$0]  (!%p868_p12), %s864_s4, 512, %s872_s6, %s874_s8, %s774_s29, %s774_s29, %s775_s30  }
  0x2c   : > { %p555_p0 = scmp.ge.s32.totalorder %s771_s15, 1  ;;  %p157_p2 = scmp.lt.s32.totalorder %s771_s15, 5 }
  0x2e   : > { %p158_p7 = pnand %p555_p0, %p157_p2 }
  0x2f   : > { %s905_s5 = sand.u32 (!%p158_p7), 1, %s763_s13  }
  0x30   : > { %161 = sbr.rel (%p158_p7) target bundleno = 529 (0x211), region = 32  ;;  %s556_s9 = sshll.u32 (!%p158_p7), %s905_s5, 5 }
  0x31   : > { %s164_s10 = scalar_lea.sflag (!%p158_p7), [#allocation3], %s905_s5  ;;  %s167_s11 = scalar_lea.vmem (!%p158_p7), [#allocation2], %s556_s9 }
  0x37   : > { %750 = dma.done.wait (%p845_p6), %s164_s10, 512  }
  0x38   : > { %752 = vsyncadd (%p845_p6), %s164_s10, 4294966784  ;;  %v200_v0 = vld [vmem:[%s981_s1] sm:$0xff]  ;;  %v201_v1 = vld [vmem:[%s981_s1 + $0x8] sm:$0xff]  ;;  %vm202_vm0 = vcmask 130048   ;;  %v776_v11 = vmov 0.0|0.0   ;;  %vm777_vm1 = vmmov 0  }
  0x39   : > { %v192_v2 = vld [vmem:[%s167_s11] sm:$0xff]  ;;  %v608_v3 = vpack.c.bf16 %v201_v1, %v200_v0  ;;  %v193_v5 = vld [vmem:[%s167_s11 + $0x8] sm:$0xff]  ;;  %v194_v6 = vld [vmem:[%s167_s11 + $0x10] sm:$0xff]  ;;  %612 = vmatprep.subr.bf16.mxu1 %v776_v11  ;;  %v778_v12 = vmov 0.0   ;;  %s557_s19 = sshll.u32 %s905_s5, 4  ;;  %vm458_vm3 = vcmask 64512  }
  0x3a   : > { %v196_v4 = vmul.f32 %v192_v2, %v192_v2  ;;  %v197_v7 = vmul.f32 %v193_v5, %v193_v5  ;;  %v198_v8 = vmul.f32 %v194_v6, %v194_v6  ;;  %v195_v9 = vld [vmem:[%s167_s11 + $0x18] sm:$0xff]  ;;  %598 = vmatprep.mubr.msk.f32.mxu1 %vm777_vm1, %v778_v12  ;;  %v300_v17 = vld [vmem:[%s980_s0] sm:$0xff]  ;;  %s571_s20 = sshll.u32 %s823_s16, 8  ;;  %s189_s22 = scalar_lea.vmem [#allocation5], %s557_s19 }
  0x3b   : > { %609 = vmatprep.subr.bf16.mxu0 %v608_v3  ;;  %v199_v10 = vmul.f32 %v195_v9, %v195_v9  ;;  %s475_s26 = sshll.u32 %s189_s22, 4  ;;  %s934_s29 = scalar_lea.hbm %s983_s3, %s571_s20  ;;  %s936_s26 = int_to_ptr.vmem [resolvable:$true] %s475_s26 }
  0x3c   : > { %588 = vmatprep.mubr.msk.f32.mxu0 %vm202_vm0, %v196_v4  ;;  %611 = vmatpush3.bf16.msra.mxu0 %v608_v3  ;;  %s462_s16 = scalar_lea.sflag [#allocation4], %s905_s5  ;;  %s705_s30 = scalar_lea.vmem %s936_s26, 256 }
  0x3d   : > { %p706_p6 = scmp.ne.s32.totalorder %s936_s26, %s705_s30  ;;  %p990_p10 = scmp.ne.s32.totalorder %s987_s24, 0 }
  0x3e   : > { %s779_s9 = smov [#allocation5]  }
  0x3f   : > { %589 = vmatmul.mubr.msk.f32.vlgmr.msra.gmra.mrb[0].mxu0 %vm202_vm0, %v197_v7  ;;  %p707_p11 = pnand %p706_p6, %p990_p10  ;;  %s709_s10 = sshll.u32 %s779_s9, 4  ;;  %s710_s10 = int_to_ptr.vmem [resolvable:$false] %s709_s10 }
  0x40   : > { %591 = vmatprep.mubr.msk.f32.mxu0 %vm202_vm0, %v198_v8  ;;  %s711_s11 = scalar_lea.vmem %s710_s10, 512  ;;  %p712_p8 = scmp.lt.s32.totalorder %s936_s26, %s710_s10 }
  0x41   : > { %p708_p12 = pneg %p707_p11  ;;  %p713_p9 = scmp.lt.s32.totalorder %s711_s11, %s705_s30 }
  0x43   : > { %592 = vmatmul.mubr.msk.f32.gmra.mrb[2].mxu0 %vm202_vm0, %v199_v10  ;;  %p714_p13 = por %p713_p9, %p712_p8 }
  0x45   : > { %p715_p1 = pnand %p714_p13, %p708_p12 }
 0x112   : > { %v590_v13 = vpop.f32.mrb[0].mxu0 }
 0x113   : > { %v281_v14 = vpop.f32.mrb[1].mxu0 }
 0x114   : > { %v613_v15 = vpack.c.bf16 %v590_v13, %v281_v14 }
 0x116   : > { %v593_v16 = vpop.f32.mrb[2].mxu0  ;;  %614 = vmatpush3.bf16.msra.mxu1 %v613_v15 }
 0x117   : > { %v291_v18 = vpop.f32.mrb[3].mxu0  ;;  %615 = vmatprep.subr.bf16.mxu1 %v776_v11 }
 0x118   : > { %v616_v19 = vpack.c.bf16 %v593_v16, %v291_v18 }
 0x119   : > { %599 = vmatmul.mubr.msk.f32.vlgmr.msra.gmra.mrb[0].mxu1 %vm202_vm0, %v300_v17 }
 0x11a   : > { %617 = vmatpush3.bf16.msra.mxu1 %v616_v19  ;;  %605 = vmatprep.mubr.msk.f32.mxu1 %vm777_vm1, %v778_v12 }
 0x11d   : > { %606 = vmatmul.mubr.msk.f32.vlgmr.msra.gmra.mrb[2].mxu1 %vm202_vm0, %v300_v17 }
 0x1ec   : > { %v370_v20 = vpop.f32.mrb[0].mxu1 }
 0x1ed   : > { %v371_v21 = vadd.f32 1e-12, %v370_v20  ;;  %v600_v22 = vpop.f32.mrb[1].mxu1 }
 0x1ef   : > { %671 = vrsqrt.f32 %v371_v21  ;;  %vm446_vm2 = vcmp.eq.f32.partialorder %v371_v21, inf  ;;  %v449_v28 = vand.u32 2147483648, %v371_v21  ;;  %vm448_vm4 = vcmp.eq.f32.partialorder %v371_v21, 0.0 }
 0x1f0   : > { %v440_v23 = vpop.f32.mrb[2].mxu1 }
 0x1f1   : > { %v441_v24 = vadd.f32 1e-12, %v440_v23  ;;  %v607_v25 = vpop.f32.mrb[3].mxu1 }
 0x1f3   : > { %673 = vrsqrt.f32 %v441_v24  ;;  %vm453_vm5 = vcmp.eq.f32.partialorder %v441_v24, inf  ;;  %v456_v33 = vand.u32 2147483648, %v441_v24  ;;  %vm455_vm6 = vcmp.eq.f32.partialorder %v441_v24, 0.0 }
 0x1f9   : > { %v672_v26 = vpop.eup %671 }
 0x1fa   : > { %v445_v27 = vmul.f32 %v672_v26, %v371_v21 }
 0x1fc   : > { %v447_v29 = vsel %vm446_vm2, %v371_v21, %v445_v27 }
 0x1fd   : > { %v674_v30 = vpop.eup %673  ;;  %v450_v31 = vsel %vm448_vm4, %v449_v28, %v447_v29 }
 0x1fe   : > { %v452_v32 = vmul.f32 %v674_v30, %v441_v24  ;;  %459 = vst.msk [vmem:[%s189_s22] sm:$0xff] %vm458_vm3, %v450_v31 }
 0x200   : > { %v454_v34 = vsel %vm453_vm5, %v441_v24, %v452_v32 }
 0x201   : > { %v457_v35 = vsel %vm455_vm6, %v456_v33, %v454_v34 }
 0x202   : > { %460 = vst.msk [vmem:[%s189_s22 + $0x8] sm:$0xff] %vm458_vm3, %v457_v35 }
 0x203   : > { %718 = shalt.err (!%p715_p1)
}
 0x204   : > { %s719_s7 = scalar_lea.hbm %s934_s29, 256  ;;  %s723_s8 = scalar_lea.hbm %s983_s3, 1024 }
 0x205   : > { %p720_p3 = scmp.ne.s32.totalorder %s934_s29, %s719_s7  ;;  %p724_p0 = scmp.lt.u32.totalorder %s934_s29, %s983_s3 }
 0x206   : > { %p725_p2 = scmp.lt.u32.totalorder %s723_s8, %s719_s7  ;;  %p727_p6 = scmp.lt.u32.totalorder %s719_s7, %s934_s29 }
 0x207   : > { %p721_p4 = pnand %p720_p3, %p990_p10 }
 0x208   : > { %p726_p7 = por %p725_p2, %p724_p0 }
 0x209   : > { %p722_p5 = pneg %p721_p4 }
 0x20a   : > { %p728_p11 = por %p727_p6, %p726_p7 }
 0x20c   : > { %p729_p12 = pnand %p728_p11, %p722_p5 }
 0x20e   : > { %732 = shalt.err (!%p729_p12)
}
 0x20f   : > { %s780_s19 = smov 128   ;;  %s781_s20 = smov 8  }
 0x210   : > { %620 = dma.vmem_to_hbm [thread:$0]  (%p990_p10), %s936_s26, 256, %s934_s29, %s462_s16, %s780_s19, %s780_s19, %s781_s20  }
 0x211 PF: > { %p631_p8 = scmp.ge.s32.totalorder %s771_s15, 2  ;;  %s490_s22 = sand.u32 1, %s759_s12  }
 0x212   : > { %p991_p9 = scmp.ne.s32.totalorder %s988_s25, 0  ;;  %s491_s27 = scalar_lea.sflag [#allocation4], %s490_s22 }
 0x214   : > { %p627_p13 = pnand %p631_p8, %p991_p9 }
 0x216   : > { %754 = dma.done.wait (!%p627_p13), %s491_s27, 256  }
 0x217   : > { %756 = vsyncadd (!%p627_p13), %s491_s27, 4294967040  ;;  %p16_p1 = scmp.ge.s32.totalorder %s827_s18, 6   ;;  %s992_s12 = smov %s763_s13 }
 0x218   : > { %s993_s13 = smov %s767_s14  ;;  %s994_s14 = smov %s839_s21 }
 0x219   : > { %s995_s15 = smov %s827_s18  ;;  %18 = sbr.rel (!%p16_p1) target bundleno = 5 (0x5), region = 77 }
 0x220   :  { %496 = vsyncpa [#allocation3], 1 }
 0x221   :  { %498 = vsyncpa [#allocation3 + $0x1], 1 }
 0x222   :  { %499 = vsyncpa [#allocation4], 1 }
 0x223   :  { %501 = vsyncpa [#allocation4 + $0x1], 1 }

</bundles_post_ra>
